<compile_context>
chip_gen: v7x
topology: tpu7x:2x2x1
jax: 0.10.0
libtpu: 0.0.40
codegen_flags: <defaults>
</compile_context>

<pallas_src>
import functools
import math

import jax
import jax.numpy as jnp
from jax import lax
from jax.experimental import pallas as pl
from jax.experimental.pallas import tpu as pltpu


def _round_up(x, m):
    return ((x + m - 1) // m) * m


def _cdiv(a, b):
    return (a + b - 1) // b


def _linear_kernel(x_ref, w_ref, b_ref, o_ref, acc_ref, *,
                   tk, d_valid, resident_w, mask_k):
    # x_ref : (TM, TK)            input tile (last K / batch tile may be partial)
    # w_ref : (C, K_total)|(C,TK) weight, native (num_classes, input_size) layout
    # b_ref : (1, C)              bias (resident)
    # o_ref : (TM, C)             output tile
    # acc_ref: (TM, C) f32        accumulator, resident across the K grid axis
    k = pl.program_id(1)

    @pl.when(k == 0)
    def _init():
        acc_ref[...] = jnp.zeros_like(acc_ref)

    x = x_ref[...]
    if mask_k:
        # Zero K columns beyond the valid input width.  The partial last K tile
        # of x is read from a partially-filled VMEM buffer; masking (rather than
        # relying on zero-padded weights) avoids the NaN*0 hazard.
        rem = d_valid - k * tk                      # >= TK on all non-last steps
        col = lax.broadcasted_iota(jnp.int32, x.shape, 1)
        x = jnp.where(col < rem, x, jnp.zeros_like(x))

    if resident_w:
        start = pl.multiple_of(k * tk, 128)
        w = w_ref[:, pl.ds(start, tk)]
    else:
        w = w_ref[...]

    # x @ w.T with D lane-dense on both operands (no transpose materialized).
    acc_ref[...] += lax.dot_general(
        x, w,
        dimension_numbers=(((1,), (1,)), ((), ())),
        preferred_element_type=jnp.float32,
    )

    @pl.when(k == pl.num_programs(1) - 1)
    def _finalize():
        o_ref[...] = (acc_ref[...] + b_ref[...].astype(jnp.float32)).astype(o_ref.dtype)


def logistic_regression_forward(x, weight, bias):
    """x: (B, ...) any trailing dims; weight: (num_classes, input_size); bias: (num_classes,)."""
    B = x.shape[0]
    x2d = x.reshape(B, -1)          # torch.flatten(x, start_dim=1)
    D = x2d.shape[1]
    C = weight.shape[0]

    itemsize = jnp.dtype(x2d.dtype).itemsize
    w_itemsize = jnp.dtype(weight.dtype).itemsize
    sub = {4: 8, 2: 16, 1: 32}.get(itemsize, 8)     # dtype-correct sublane multiple

    # ---- tile selection (no rounding of B/D beyond the hardware minimum) ----
    TM = min(512, _round_up(B, sub))
    # Keep >= 2 batch tiles when the batch allows it (v7x megacore: both TCs busy).
    if B >= 2 * sub and _cdiv(B, TM) < 2:
        TM = _round_up(_cdiv(B, 2), sub)
    TK = min(2048, _round_up(D, 128))               # lane axis: multiple of 128

    n_b = _cdiv(B, TM)
    n_k = _cdiv(D, TK)                              # last K tile may be partial
    K_total = n_k * TK
    mask_k = (D % TK) != 0

    # Pad only the tiny weight in K so every K slice of it is in-bounds and
    # zero-filled.  x streams straight from its original HBM buffer.
    if K_total != D:
        weight = jnp.pad(weight, ((0, 0), (0, K_total - D)))
    b2d = bias.reshape(1, C)

    # Weight fully resident in VMEM when it comfortably fits (single fetch);
    # otherwise stream (C, TK) tiles per K step (guards very large D / v7x VMEM).
    resident_w = (_round_up(C, sub) * K_total * w_itemsize) <= (8 << 20)

    if resident_w:
        w_spec = pl.BlockSpec((C, K_total), lambda i, k: (0, 0))
    else:
        w_spec = pl.BlockSpec((C, TK), lambda i, k: (0, k))

    # ---- VMEM budget (explicit, capped below v7x's 64 MiB physical) ----
    c_lane = _round_up(C, 128)
    footprint = (
        2 * TM * TK * itemsize                                    # x, double-buffered
        + 2 * _round_up(C, sub) * (K_total if resident_w else TK) * w_itemsize
        + 2 * TM * c_lane * itemsize                              # out
        + TM * c_lane * 4                                         # f32 accumulator
        + 2 * sub * c_lane * 4                                    # bias
    )
    vmem_limit = min(48 << 20, max(32 << 20, footprint + (4 << 20)))

    # Honest advisory cost: x read once, weight fetched once (resident) or per
    # batch tile, output written once.
    cost = pl.CostEstimate(
        flops=2 * B * D * C,
        transcendentals=0,
        bytes_accessed=(B * D * itemsize
                        + (1 if resident_w else n_b) * C * K_total * w_itemsize
                        + C * 4
                        + B * C * itemsize),
    )

    kernel = functools.partial(
        _linear_kernel, tk=TK, d_valid=D, resident_w=resident_w, mask_k=mask_k)

    out = pl.pallas_call(
        kernel,
        out_shape=jax.ShapeDtypeStruct((B, C), x2d.dtype),
        grid_spec=pltpu.PrefetchScalarGridSpec(
            num_scalar_prefetch=0,
            grid=(n_b, n_k),
            in_specs=[
                pl.BlockSpec((TM, TK), lambda i, k: (i, k)),     # x tile
                w_spec,                                          # weight (native layout)
                pl.BlockSpec((1, C), lambda i, k: (0, 0)),       # bias (resident)
            ],
            out_specs=pl.BlockSpec((TM, C), lambda i, k: (i, 0)),
            scratch_shapes=[pltpu.VMEM((TM, C), jnp.float32)],
        ),
        compiler_params=pltpu.CompilerParams(
            dimension_semantics=("parallel", "arbitrary"),
            vmem_limit_bytes=int(vmem_limit),
        ),
        cost_estimate=cost,
    )(x2d, weight, b2d)

    return out


def init_params(key, input_size, num_classes, init_scale=1.0, activation="linear"):
    """xavier_uniform-style init (gain * calculate_gain('linear') == gain), zero bias —
    mirrors linear_init/scale_init semantics of the PyTorch module."""
    gain = init_scale * 1.0  # calculate_gain('linear') == 1.0
    limit = gain * math.sqrt(6.0 / (input_size + num_classes))
    weight = jax.random.uniform(
        key, (num_classes, input_size), dtype=jnp.float32, minval=-limit, maxval=limit
    )
    bias = jnp.zeros((num_classes,), dtype=jnp.float32)
    return weight, bias


if __name__ == "__main__":
    key = jax.random.PRNGKey(0)
    kx, kw = jax.random.split(key)

    # Small shapes: batch=2, channels=4, spatial=16 -> input_size = 4*16*16 = 1024
    B, C_in, H, W = 2, 4, 16, 16
    num_classes = 10
    input_size = C_in * H * W

    x = jax.random.normal(kx, (B, C_in, H, W), dtype=jnp.float32)
    weight, bias = init_params(kw, input_size, num_classes)

    y = logistic_regression_forward(x, weight, bias)
    y = jax.block_until_ready(y)

    # Reference check in plain JAX
    y_ref = x.reshape(B, -1) @ weight.T + bias
    assert y.shape == (B, num_classes)
    assert jnp.allclose(y, y_ref, atol=1e-4, rtol=1e-4)

    print("KERNEL_OK")
</pallas_src>

<mosaic_0001>
module attributes {stable_mosaic.version = 11 : i64} {
  func.func @_linear_kernel(%arg0: i32, %arg1: i32, %arg2: memref<8x1024xf32, #tpu.memory_space<vmem>>, %arg3: memref<10x1024xf32, #tpu.memory_space<vmem>>, %arg4: memref<1x10xf32, #tpu.memory_space<vmem>>, %arg5: memref<8x10xf32, #tpu.memory_space<vmem>>, %arg6: memref<8x10xf32, #tpu.memory_space<vmem>>) attributes {dimension_semantics = [#tpu.dimension_semantics<parallel>, #tpu.dimension_semantics<arbitrary>], iteration_bounds = array<i64: 1, 1>, scalar_prefetch = 0 : i64, scratch_operands = 1 : i64, tpu.core_type = #tpu.core_type<tc>, window_params = [{transform_indices = @transform_0, window_bounds = array<i64: 8, 1024>}, {pipeline_mode = #tpu.pipeline_mode<synchronous>, transform_indices = @transform_1, window_bounds = array<i64: 10, 1024>}, {pipeline_mode = #tpu.pipeline_mode<synchronous>, transform_indices = @transform_2, window_bounds = array<i64: 1, 10>}, {transform_indices = @transform_3, window_bounds = array<i64: 8, 10>}]} {
    %c0_i32 = arith.constant 0 : i32
    %0 = arith.cmpi eq, %arg1, %c0_i32 : i32
    %1 = arith.extui %0 : i1 to i32
    %c0_i32_0 = arith.constant 0 : i32
    %2 = arith.cmpi ne, %1, %c0_i32_0 : i32
    scf.if %2 {
      %cst_9 = arith.constant 0.000000e+00 : f32
      %15 = vector.broadcast %cst_9 : f32 to vector<8x10xf32>
      %c0_10 = arith.constant 0 : index
      %c0_11 = arith.constant 0 : index
      %16 = vector.load %arg6[%c0_10, %c0_11] : memref<8x10xf32, #tpu.memory_space<vmem>>, vector<8x10xf32>
      tpu.vector_store %arg6[%c0_10, %c0_11], %15 {strides = array<i32>} : memref<8x10xf32, #tpu.memory_space<vmem>>, vector<8x10xf32>,
    } else {
    }
    %c0 = arith.constant 0 : index
    %c0_1 = arith.constant 0 : index
    %3 = vector.load %arg2[%c0, %c0_1] : memref<8x1024xf32, #tpu.memory_space<vmem>>, vector<8x1024xf32>
    %c1024_i32 = arith.constant 1024 : i32
    %4 = arith.muli %arg1, %c1024_i32 : i32
    %5 = tpu.assume_multiple %4, 128 : i32
    %c0_2 = arith.constant 0 : index
    %6 = arith.index_cast %5 : i32 to index
    %7 = vector.load %arg3[%c0_2, %6] : memref<10x1024xf32, #tpu.memory_space<vmem>>, vector<10x1024xf32>
    %c0_3 = arith.constant 0 : index
    %c0_4 = arith.constant 0 : index
    %8 = vector.load %arg6[%c0_3, %c0_4] : memref<8x10xf32, #tpu.memory_space<vmem>>, vector<8x10xf32>
    %cst = arith.constant dense<0.000000e+00> : vector<8x10xf32>
    %9 = tpu.matmul %3, %7, %cst {dimension_numbers = #tpu.dot_dimension_numbers<[1], [1], [0], [0], [0, 0, 1, 0], [], []>} : vector<8x1024xf32>, vector<10x1024xf32>, vector<8x10xf32> -> vector<8x10xf32>
    %10 = arith.addf %8, %9 : vector<8x10xf32>
    %c0_5 = arith.constant 0 : index
    %c0_6 = arith.constant 0 : index
    %11 = vector.load %arg6[%c0_5, %c0_6] : memref<8x10xf32, #tpu.memory_space<vmem>>, vector<8x10xf32>
    tpu.vector_store %arg6[%c0_5, %c0_6], %10 {strides = array<i32>} : memref<8x10xf32, #tpu.memory_space<vmem>>, vector<8x10xf32>,
    %c0_i32_7 = arith.constant 0 : i32
    %12 = arith.cmpi eq, %arg1, %c0_i32_7 : i32
    %13 = arith.extui %12 : i1 to i32
    %c0_i32_8 = arith.constant 0 : i32
    %14 = arith.cmpi ne, %13, %c0_i32_8 : i32
    scf.if %14 {
      %c0_9 = arith.constant 0 : index
      %c0_10 = arith.constant 0 : index
      %15 = vector.load %arg6[%c0_9, %c0_10] : memref<8x10xf32, #tpu.memory_space<vmem>>, vector<8x10xf32>
      %c0_11 = arith.constant 0 : index
      %c0_12 = arith.constant 0 : index
      %16 = vector.load %arg4[%c0_11, %c0_12] : memref<1x10xf32, #tpu.memory_space<vmem>>, vector<1x10xf32>
      %17 = vector.broadcast %16 : vector<1x10xf32> to vector<8x10xf32>
      %18 = arith.addf %15, %17 : vector<8x10xf32>
      %c0_13 = arith.constant 0 : index
      %c0_14 = arith.constant 0 : index
      %19 = vector.load %arg5[%c0_13, %c0_14] : memref<8x10xf32, #tpu.memory_space<vmem>>, vector<8x10xf32>
      tpu.vector_store %arg5[%c0_13, %c0_14], %18 {strides = array<i32>} : memref<8x10xf32, #tpu.memory_space<vmem>>, vector<8x10xf32>,
    } else {
    }
    return
  }
  func.func @transform_0(%arg0: i32, %arg1: i32) -> (i32, i32) {
    %c0_i32 = arith.constant 0 : i32
    return %arg0, %arg1 : i32, i32
  }
  func.func @transform_1(%arg0: i32, %arg1: i32) -> (i32, i32) {
    %c0_i32 = arith.constant 0 : i32
    %c0_i32_0 = arith.constant 0 : i32
    %c0_i32_1 = arith.constant 0 : i32
    return %c0_i32, %c0_i32_0 : i32, i32
  }
  func.func @transform_2(%arg0: i32, %arg1: i32) -> (i32, i32) {
    %c0_i32 = arith.constant 0 : i32
    %c0_i32_0 = arith.constant 0 : i32
    %c0_i32_1 = arith.constant 0 : i32
    return %c0_i32, %c0_i32_0 : i32, i32
  }
  func.func @transform_3(%arg0: i32, %arg1: i32) -> (i32, i32) {
    %c0_i32 = arith.constant 0 : i32
    %c0_i32_0 = arith.constant 0 : i32
    return %arg0, %c0_i32 : i32, i32
  }
}

</mosaic_0001>

<bundles_post_ra>
// kernel: tpu_custom_call.1
= control target key start
LH: loop header
LB: loop body
LE: loop exit
PB: predicated region body
PF: predicated region fallthrough
CT: control target
= control target key end

     0   :  { %8 = vsyncpa [#allocation4], 0  ;;  %s668_s0 = inlined_call_operand.hbm [shape: f32[2,1024], index: 0, kind: input, shape index: {}]   ;;  %s669_s1 = inlined_call_operand.hbm [shape: f32[10,1024], index: 1, kind: input, shape index: {}]   ;;  %s670_s2 = inlined_call_operand.vmem [shape: f32[1,10], index: 2, kind: input, shape index: {}]   ;;  %s671_s3 = inlined_call_operand.hbm [shape: f32[2,10], index: 3, kind: output, shape index: {}]  }
   0x1   :  { %9 = vsyncpa [#allocation7], 0 }
   0x2   :  { %10 = vsyncpa [#allocation5], 0 }
   0x3   :  { %15 = vsyncadd [#allocation4], 768  ;;  %s595_s12 = smov [#allocation3]   ;;  %s523_s16 = scalar_lea.hbm %s668_s0, 256 }
   0x4   :  { %s16_s13 = sshll.u32 %s595_s12, 4  ;;  %p524_p0 = scmp.ne.s32.totalorder %s668_s0, %s523_s16  ;;  %s17_s13 = int_to_ptr.vmem [resolvable:$true] %s16_s13 }
   0x5   :  { %p527_p1 = scmp.lt.u32.totalorder %s523_s16, %s668_s0 }
   0x7   :  { %p529_p2 = pnand %p527_p1, %p524_p0 }
   0x9   :  { %532 = shalt.err (!%p529_p2)
}
   0xa   :  { %s533_s21 = scalar_lea.vmem %s17_s13, 256  ;;  %s537_s22 = scalar_lea.vmem %s17_s13, 1024 }
   0xb   :  { %p534_p3 = scmp.ne.s32.totalorder %s17_s13, %s533_s21  ;;  %p538_p4 = scmp.lt.s32.totalorder %s17_s13, %s17_s13 }
   0xc   :  { %p539_p5 = scmp.lt.s32.totalorder %s537_s22, %s533_s21 }
   0xe   :  { %p540_p6 = por %p539_p5, %p538_p4 }
  0x10   :  { %p541_p7 = pnand %p540_p6, %p534_p3 }
  0x12   :  { %544 = shalt.err (!%p541_p7)
}
  0x13   :  { %s596_s23 = smov 256   ;;  %s597_s24 = smov 16  }
  0x14   :  { %22 = dma.hbm_to_vmem [thread:$0]  %s668_s0, 256, %s17_s13, [#allocation4], %s596_s23, %s596_s23, %s597_s24  }
  0x15   :  { %s598_s27 = smov [#allocation6]   ;;  %s545_s4 = scalar_lea.hbm %s669_s1, 2048 }
  0x16   :  { %s28_s28 = sshll.u32 %s598_s27, 4  ;;  %p546_p8 = scmp.ne.s32.totalorder %s669_s1, %s545_s4  ;;  %s29_s28 = int_to_ptr.vmem [resolvable:$true] %s28_s28 }
  0x17   :  { %p549_p9 = scmp.lt.u32.totalorder %s545_s4, %s669_s1 }
  0x19   :  { %p551_p10 = pnand %p549_p9, %p546_p8 }
  0x1b   :  { %554 = shalt.err (!%p551_p10)
}
  0x1c   :  { %s555_s9 = scalar_lea.vmem %s29_s28, 2048  ;;  %p560_p12 = scmp.lt.s32.totalorder %s29_s28, %s29_s28 }
  0x1d   :  { %p556_p11 = scmp.ne.s32.totalorder %s29_s28, %s555_s9  ;;  %p561_p13 = scmp.lt.s32.totalorder %s555_s9, %s555_s9 }
  0x1f   :  { %p562_p0 = por %p561_p13, %p560_p12 }
  0x21   :  { %p563_p1 = pnand %p562_p0, %p556_p11 }
  0x23   :  { %566 = shalt.err (!%p563_p1)
}
  0x24   :  { %s599_s0 = smov 1024   ;;  %s600_s10 = smov 64  }
  0x25   :  { %34 = dma.hbm_to_vmem [thread:$0]  %s669_s1, 2048, %s29_s28, [#allocation7], %s599_s0, %s599_s0, %s600_s10  }
  0x26   :  { %589 = dma.done.wait [#allocation4], 1024  }
  0x27   :  { %590 = vsyncadd [#allocation4], 4294966272 }
  0x28   :  { %591 = dma.done.wait [#allocation7], 2048  }
  0x29   :  { %592 = vsyncadd [#allocation7], 4294965248  ;;  %v601_v0 = vmov 1983009808   ;;  %v94_v2 = vlaneseq  ;;  %v63_v5 = vld [vmem:[#allocation6 + $0x8] sm:$0xff]  ;;  %v62_v7 = vld [vmem:[#allocation6] sm:$0xff] }
  0x2a   :  { %v92_v1 = vunpack.c.l.s4 %v601_v0  ;;  %v71_v6 = vld [vmem:[#allocation6 + $0x48] sm:$0x3]  ;;  %v70_v9 = vld [vmem:[#allocation6 + $0x40] sm:$0x3]  ;;  %v65_v10 = vld [vmem:[#allocation6 + $0x18] sm:$0xff]  ;;  %vm47_vm0 = vcmask 80896  }
  0x2b   :  { %v95_v4 = vshrl.u32 %v94_v2, 7  ;;  %v484_v8 = vpack.c.bf16 %v71_v6, %v63_v5  ;;  %v73_v11 = vld [vmem:[#allocation6 + $0x58] sm:$0x3]  ;;  %v486_v12 = vpack.c.bf16 %v70_v9, %v62_v7  ;;  %v64_v14 = vld [vmem:[#allocation6 + $0x10] sm:$0xff]  ;;  %v67_v22 = vld [vmem:[#allocation6 + $0x28] sm:$0xff]  ;;  %v602_v54 = vmov 0.0  }
  0x2c   :  { %v93_v3 = vunpack.c.0.s8 %v92_v1  ;;  %v488_v13 = vpack.c.bf16 %v73_v11, %v65_v10  ;;  %v72_v15 = vld [vmem:[#allocation6 + $0x50] sm:$0x3]  ;;  %v515_v20 = vld [vmem:[#allocation3 + $0x4] ss:$16 sps:$4 sm:$0xff]   ;;  %v75_v23 = vld [vmem:[#allocation6 + $0x68] sm:$0x3] }
  0x2d   :  { %485 = vmatprep.subr.bf16.mxu0 %v484_v8  ;;  %v490_v17 = vpack.c.bf16 %v72_v15, %v64_v14  ;;  %v511_v18 = vld [vmem:[#allocation3] ss:$16 sps:$4 sm:$0xff]   ;;  %v516_v21 = vld [vmem:[#allocation3 + $0x24] ss:$16 sps:$4 sm:$0xff]   ;;  %v492_v27 = vpack.c.bf16 %v75_v23, %v67_v22  ;;  %v69_v30 = vld [vmem:[#allocation6 + $0x38] sm:$0xff]  ;;  %48 = vst.msk [vmem:[#allocation2] sm:$0xff] %vm47_vm0, %v602_v54 }
  0x2e   :  { %v96_v16 = vsub.s32 %v93_v3, %v95_v4  ;;  %487 = vmatpush1.bf16.xpose.msra.mxu0 %v486_v12  ;;  %489 = vmatprep.subr.bf16.mxu1 %v488_v13  ;;  %v513_v19 = vld [vmem:[#allocation3 + $0x20] ss:$16 sps:$4 sm:$0xff]   ;;  %v77_v32 = vld [vmem:[#allocation6 + $0x78] sm:$0x3]  ;;  %v521_v44 = vld [vmem:[#allocation3 + $0xc] ss:$16 sps:$4 sm:$0xff]  }
  0x2f   :  { %491 = vmatpush1.bf16.xpose.msra.mxu1 %v490_v17  ;;  %v66_v28 = vld [vmem:[#allocation6 + $0x20] sm:$0xff]  ;;  %v68_v33 = vld [vmem:[#allocation6 + $0x30] sm:$0xff]  ;;  %493 = vmatprep.subr.bf16.mxu0 %v492_v27  ;;  %v496_v38 = vpack.c.bf16 %v77_v32, %v69_v30  ;;  %v517_v42 = vld [vmem:[#allocation3 + $0x8] ss:$16 sps:$4 sm:$0xff]  }
  0x30   :  { %v97_v24 = vrot.slane %v511_v18, %v96_v16  ;;  %v111_v25 = vrot.slane %v513_v19, %v96_v16  ;;  %v104_v26 = vrot.slane %v515_v20, %v96_v16  ;;  %v74_v29 = vld [vmem:[#allocation6 + $0x60] sm:$0x3]  ;;  %v118_v31 = vrot.slane %v516_v21, %v96_v16  ;;  %v76_v34 = vld [vmem:[#allocation6 + $0x70] sm:$0x3]  ;;  %v519_v43 = vld [vmem:[#allocation3 + $0x28] ss:$16 sps:$4 sm:$0xff]  }
  0x31   :  { %v494_v37 = vpack.c.bf16 %v74_v29, %v66_v28  ;;  %v498_v41 = vpack.c.bf16 %v76_v34, %v68_v33  ;;  %497 = vmatprep.subr.bf16.mxu1 %v496_v38  ;;  %v522_v45 = vld [vmem:[#allocation3 + $0x2c] ss:$16 sps:$4 sm:$0xff]   ;;  %v133_v46 = vrot.slane %v517_v42, %v96_v16  ;;  %v147_v47 = vrot.slane %v519_v43, %v96_v16  ;;  %v483_v4 = vld [vmem:[%s670_s2] ss:$0 sm:$0xff] }
  0x32   :  { %v120_v35 = vcombine.high %v97_v24, %v111_v25  ;;  %v119_v36 = vcombine.low %v97_v24, %v111_v25  ;;  %v122_v39 = vcombine.high %v104_v26, %v118_v31  ;;  %v121_v40 = vcombine.low %v104_v26, %v118_v31 }
  0x33   :  { %v140_v48 = vrot.slane %v521_v44, %v96_v16  ;;  %v154_v49 = vrot.slane %v522_v45, %v96_v16  ;;  %v156_v50 = vcombine.high %v133_v46, %v147_v47  ;;  %v155_v52 = vcombine.low %v133_v46, %v147_v47 }
  0x34   :  { %231 = vmatprep.mubr.f32.mxu0 %v120_v35  ;;  %301 = vmatprep.mubr.f32.mxu1 %v122_v39  ;;  %v78_v0 = vld [vmem:[#allocation2] sm:$0xff] }
  0x35   :  { %232 = vmatmul.mubr.f32.vlgmr.msra.gmra.mrb[0].mxu0 %v119_v36  ;;  %v158_v51 = vcombine.high %v140_v48, %v154_v49  ;;  %v157_v53 = vcombine.low %v140_v48, %v154_v49 }
  0x36   :  { %302 = vmatmul.mubr.f32.vlgmr.msra.gmra.mrb[0].mxu1 %v121_v40  ;;  %495 = vmatpush1.bf16.xpose.msra.mxu0 %v494_v37 }
  0x37   :  { %499 = vmatpush1.bf16.xpose.msra.mxu1 %v498_v41  ;;  %371 = vmatprep.mubr.f32.mxu0 %v156_v50 }
  0x38   :  { %441 = vmatprep.mubr.f32.mxu1 %v158_v51 }
  0x3d   :  { %372 = vmatmul.mubr.f32.vlgmr.msra.gmra.mrb[2].mxu0 %v155_v52 }
  0x3e   :  { %442 = vmatmul.mubr.f32.vlgmr.msra.gmra.mrb[2].mxu1 %v157_v53 }
 0x108   :  { %v233_v55 = vpop.f32.mrb[0].mxu0 }
 0x109   :  { %v235_v56 = vpop.f32.mrb[1].mxu0  ;;  %v303_v57 = vpop.f32.mrb[0].mxu1 }
 0x10a   :  { %v304_v58 = vadd.f32 %v303_v57, %v233_v55  ;;  %v305_v59 = vpop.f32.mrb[1].mxu1 }
 0x110   :  { %v373_v60 = vpop.f32.mrb[2].mxu0 }
 0x111   :  { %v374_v61 = vadd.f32 %v373_v60, %v304_v58  ;;  %v375_v62 = vpop.f32.mrb[3].mxu0  ;;  %v443_v63 = vpop.f32.mrb[2].mxu1 }
 0x112   :  { %v445_v1 = vpop.f32.mrb[3].mxu1 }
 0x113   :  { %v444_v2 = vadd.f32 %v443_v63, %v374_v61 }
 0x115   :  { %v447_v3 = vadd.f32 %v444_v2, %v78_v0 }
 0x117   :  { %449 = vst.msk [vmem:[#allocation2] sm:$0xff] %vm47_vm0, %v447_v3 }
 0x11e   :  { %v453_v5 = vld [vmem:[#allocation2] sm:$0xff] }
 0x11f   :  { %v461_v6 = vadd.f32 %v483_v4, %v453_v5 }
 0x121   :  { %462 = vst.msk [vmem:[#allocation8] sm:$0xff] %vm47_vm0, %v461_v6 }
 0x122   :  { %467 = vsyncadd [#allocation5], 96  ;;  %s603_s14 = smov [#allocation8]  }
 0x123   :  { %s468_s15 = sshll.u32 %s603_s14, 4  ;;  %s469_s15 = int_to_ptr.vmem [resolvable:$true] %s468_s15 }
 0x124   :  { %s567_s16 = scalar_lea.vmem %s469_s15, 32  ;;  %s571_s17 = scalar_lea.vmem %s469_s15, 128 }
 0x125   :  { %p568_p2 = scmp.ne.s32.totalorder %s469_s15, %s567_s16  ;;  %p572_p3 = scmp.lt.s32.totalorder %s469_s15, %s469_s15 }
 0x126   :  { %p573_p4 = scmp.lt.s32.totalorder %s571_s17, %s567_s16 }
 0x128   :  { %p574_p5 = por %p573_p4, %p572_p3 }
 0x12a   :  { %p575_p6 = pnand %p574_p5, %p568_p2 }
 0x12c   :  { %578 = shalt.err (!%p575_p6)
}
 0x12d   :  { %s579_s2 = scalar_lea.hbm %s671_s3, 32 }
 0x12e   :  { %p580_p7 = scmp.ne.s32.totalorder %s671_s3, %s579_s2  ;;  %p583_p8 = scmp.lt.u32.totalorder %s579_s2, %s671_s3 }
 0x130   :  { %p585_p9 = pnand %p583_p8, %p580_p7 }
 0x132   :  { %588 = shalt.err (!%p585_p9)
}
 0x133   :  { %s604_s24 = smov 32   ;;  %s605_s25 = smov 2  }
 0x134   :  { %474 = dma.vmem_to_hbm [thread:$0]  %s469_s15, 32, %s671_s3, [#allocation5], %s604_s24, %s604_s24, %s605_s25  }
 0x135   :  { %593 = dma.done.wait [#allocation5], 128  }
 0x136   :  { %594 = vsyncadd [#allocation5], 4294967168 }
 0x137   :  { %478 = vsyncpa [#allocation4], 1 }
 0x138   :  { %479 = vsyncpa [#allocation7], 1 }
 0x139   :  { %480 = vsyncpa [#allocation5], 1 }

</bundles_post_ra>
